<compile_context>
chip_gen: v7x
topology: tpu7x:2x2x1
jax: 0.10.0
libtpu: 0.0.40
codegen_flags: <defaults>
</compile_context>

<pallas_src>
import functools

import jax
import jax.numpy as jnp
from jax.experimental import pallas as pl
from jax.experimental.pallas import tpu as pltpu

LN_EPS = 1e-5          # PyTorch nn.LayerNorm default
NEG_SLOPE = 0.2        # LeakyReLU(0.2)
ND = 512               # hidden width from the module
OUT_PAD = 128          # final projection padded to a lane-dense width
TM_MAX = 256           # max batch tile (fills MXU rows on v6e/v7x)


def _round_up(x, m):
    return ((x + m - 1) // m) * m


def _choose_tm(B):
    """Adaptive batch tile.

    Small batches: one tile rounded to the 8-row sublane quantum (no garbage
    rows beyond alignment).  Larger batches: split into >= 2 grid steps so the
    'parallel' axis can shard across both TensorCores on v7x, capped at 256
    rows (256 is fine on v5e/v6e too; sweepable per generation).
    """
    if B <= 128:
        return _round_up(B, 8)
    return min(TM_MAX, _round_up(-(-B // 2), 8))


def _ln_lrelu(h, p_ref, base, width):
    """Bias + LayerNorm (stable, centered variance) + LeakyReLU, all in f32."""
    b    = p_ref[base + 0:base + 1, 0:width]          # (1, width)
    g    = p_ref[base + 1:base + 2, 0:width]
    beta = p_ref[base + 2:base + 3, 0:width]
    h = h + b
    mu = jnp.mean(h, axis=-1, keepdims=True)
    c = h - mu
    var = jnp.mean(c * c, axis=-1, keepdims=True)      # >= 0 by construction
    h = c * (g * jax.lax.rsqrt(var + LN_EPS)) + beta
    return jnp.maximum(h, NEG_SLOPE * h)               # LeakyReLU(0.2)


def length_estimator_kernel(x_ref, w1_ref, w2_ref, w3_ref, w4_ref, p_ref, o_ref):
    # Dropout(0.2) layers -> identity (eval mode).
    x = x_ref[...]                                     # already bf16, lane-dense

    h = jnp.dot(x, w1_ref[...], preferred_element_type=jnp.float32)
    h = _ln_lrelu(h, p_ref, 0, ND)                     # (TM, 512) f32

    h = jnp.dot(h.astype(jnp.bfloat16), w2_ref[...],
                preferred_element_type=jnp.float32)
    h = _ln_lrelu(h, p_ref, 3, ND // 2)                # (TM, 256)

    h = jnp.dot(h.astype(jnp.bfloat16), w3_ref[...],
                preferred_element_type=jnp.float32)
    h = _ln_lrelu(h, p_ref, 6, ND // 4)                # (TM, 128)

    out = jnp.dot(h.astype(jnp.bfloat16), w4_ref[...],
                  preferred_element_type=jnp.float32)
    out = out + p_ref[9:10, 0:OUT_PAD]
    o_ref[...] = out.astype(o_ref.dtype)               # lane-dense (TM, 128) store


def init_params(key, input_size, output_size):
    """Deterministic init mirroring the module: Linear ~ N(0, 0.02), bias 0,
    LayerNorm weight 1, bias 0.  Linear weights stored (in, out), bf16 for the
    MXU; small params packed into one f32 slab.  w1's K dim is zero-padded to
    a multiple of 128 (lane-dense x), w4's out dim to 128 (lane-dense store)."""
    assert output_size <= OUT_PAD
    k_pad = _round_up(input_size, 128)
    dims = [(input_size, ND), (ND, ND // 2), (ND // 2, ND // 4), (ND // 4, output_size)]
    keys = jax.random.split(key, len(dims))
    ws = [0.02 * jax.random.normal(k, (din, dout), dtype=jnp.float32)
          for (din, dout), k in zip(dims, keys)]
    w1, w2, w3, w4 = ws
    w1 = jnp.pad(w1, ((0, k_pad - input_size), (0, 0)))       # zero K-pad
    w4 = jnp.pad(w4, ((0, 0), (0, OUT_PAD - output_size)))    # zero out-pad
    weights = tuple(w.astype(jnp.bfloat16) for w in (w1, w2, w3, w4))

    # Packed param slab (10, 512):
    #   rows 0-2: b1, gamma1, beta1   (width 512)
    #   rows 3-5: b2, gamma2, beta2   (width 256, zero padded)
    #   rows 6-8: b3, gamma3, beta3   (width 128, zero padded)
    #   row    9: b4                  (width 128, zero padded)
    pslab = jnp.zeros((10, ND), dtype=jnp.float32)
    pslab = pslab.at[1, :ND].set(1.0)           # gamma1
    pslab = pslab.at[4, :ND // 2].set(1.0)      # gamma2
    pslab = pslab.at[7, :ND // 4].set(1.0)      # gamma3
    # Linear biases and LayerNorm betas are zero at init.
    return weights, pslab


@functools.partial(jax.jit, static_argnames=("output_size", "out_dtype"))
def length_estimator(x, weights, pslab, output_size, out_dtype=jnp.float32):
    w1, w2, w3, w4 = weights
    B, input_size = x.shape
    k_pad = w1.shape[0]                 # lane-padded input width

    tm = _choose_tm(B)
    b_pad = _round_up(B, tm)

    # bf16 + lane-dense input prepared once in the wrapper.
    x = x.astype(jnp.bfloat16)
    if (b_pad, k_pad) != (B, input_size):
        x = jnp.pad(x, ((0, b_pad - B), (0, k_pad - input_size)))

    const = lambda i: (0, 0)
    out = pl.pallas_call(
        length_estimator_kernel,
        out_shape=jax.ShapeDtypeStruct((b_pad, OUT_PAD), out_dtype),
        grid_spec=pltpu.PrefetchScalarGridSpec(
            num_scalar_prefetch=0,
            grid=(b_pad // tm,),
            in_specs=[
                pl.BlockSpec((tm, k_pad), lambda i: (i, 0)),   # x tile
                # Weights + packed params stay VMEM-resident (constant index
                # map).  For very large input_size (w1 >> a few MiB) add
                # pipeline_mode=pl.Buffered(1) to drop the second buffer.
                pl.BlockSpec(w1.shape, const),
                pl.BlockSpec(w2.shape, const),
                pl.BlockSpec(w3.shape, const),
                pl.BlockSpec(w4.shape, const),
                pl.BlockSpec(pslab.shape, const),              # packed small params
            ],
            out_specs=pl.BlockSpec((tm, OUT_PAD), lambda i: (i, 0)),
        ),
        compiler_params=pltpu.CompilerParams(
            dimension_semantics=("parallel",)),
    )(x, w1, w2, w3, w4, pslab)
    return out[:B, :output_size]


def reference(x, weights, pslab, output_size):
    """Pure-JAX reference with matching bf16-operand / f32-accumulate matmuls."""
    w1, w2, w3, w4 = weights
    k_pad = w1.shape[0]
    if k_pad != x.shape[1]:
        x = jnp.pad(x, ((0, 0), (0, k_pad - x.shape[1])))

    def block(h, w, base, width):
        b = pslab[base, :width]
        g = pslab[base + 1, :width]
        be = pslab[base + 2, :width]
        h = jnp.dot(h.astype(jnp.bfloat16), w,
                    preferred_element_type=jnp.float32) + b
        mu = h.mean(-1, keepdims=True)
        var = ((h - mu) ** 2).mean(-1, keepdims=True)
        h = (h - mu) / jnp.sqrt(var + LN_EPS) * g + be
        return jnp.where(h >= 0, h, NEG_SLOPE * h)

    h = block(x, w1, 0, ND)
    h = block(h, w2, 3, ND // 2)
    h = block(h, w3, 6, ND // 4)
    out = jnp.dot(h.astype(jnp.bfloat16), w4,
                  preferred_element_type=jnp.float32) + pslab[9, :OUT_PAD]
    return out[:, :output_size]


if __name__ == "__main__":
    key = jax.random.PRNGKey(0)
    k_x, k_p = jax.random.split(key)

    batch = 8
    input_size = 32     # text embedding dim (small, synthetic)
    output_size = 16    # number of length bins (small, synthetic)

    x = jax.random.normal(k_x, (batch, input_size), dtype=jnp.float32)
    weights, pslab = init_params(k_p, input_size, output_size)

    ref = reference(x, weights, pslab, output_size)

    # f32-output path (tight check against the JAX reference).
    out = length_estimator(x, weights, pslab, output_size, out_dtype=jnp.float32)
    out = jax.block_until_ready(out)
    assert out.shape == (batch, output_size)
    # bf16-operand matmuls on both sides; small slack for MXU vs XLA
    # accumulation-order / re-rounding differences.
    assert jnp.allclose(out, ref, atol=5e-3, rtol=5e-3), "f32 output mismatch vs JAX reference"

    # bf16-output path (halved writeback stream; looser tolerance for the
    # final bf16 rounding).
    out_bf16 = length_estimator(x, weights, pslab, output_size, out_dtype=jnp.bfloat16)
    out_bf16 = jax.block_until_ready(out_bf16)
    assert out_bf16.shape == (batch, output_size)
    assert jnp.allclose(out_bf16.astype(jnp.float32), ref, atol=2e-2, rtol=2e-2), \
        "bf16 output mismatch vs JAX reference"

    print("KERNEL_OK")
</pallas_src>

<mosaic_0001>
module attributes {stable_mosaic.version = 11 : i64} {
  func.func @length_estimator_kernel(%arg0: i32, %arg1: memref<8x128xbf16, #tpu.memory_space<vmem>>, %arg2: memref<128x512xbf16, #tpu.memory_space<vmem>>, %arg3: memref<512x256xbf16, #tpu.memory_space<vmem>>, %arg4: memref<256x128xbf16, #tpu.memory_space<vmem>>, %arg5: memref<128x128xbf16, #tpu.memory_space<vmem>>, %arg6: memref<10x512xf32, #tpu.memory_space<vmem>>, %arg7: memref<8x128xf32, #tpu.memory_space<vmem>>) attributes {dimension_semantics = [#tpu.dimension_semantics<parallel>], iteration_bounds = array<i64: 1>, scalar_prefetch = 0 : i64, scratch_operands = 0 : i64, tpu.core_type = #tpu.core_type<tc>, window_params = [{transform_indices = @transform_0, window_bounds = array<i64: 8, 128>}, {pipeline_mode = #tpu.pipeline_mode<synchronous>, transform_indices = @transform_1, window_bounds = array<i64: 128, 512>}, {pipeline_mode = #tpu.pipeline_mode<synchronous>, transform_indices = @transform_2, window_bounds = array<i64: 512, 256>}, {pipeline_mode = #tpu.pipeline_mode<synchronous>, transform_indices = @transform_3, window_bounds = array<i64: 256, 128>}, {pipeline_mode = #tpu.pipeline_mode<synchronous>, transform_indices = @transform_4, window_bounds = array<i64: 128, 128>}, {pipeline_mode = #tpu.pipeline_mode<synchronous>, transform_indices = @transform_5, window_bounds = array<i64: 10, 512>}, {transform_indices = @transform_6, window_bounds = array<i64: 8, 128>}]} {
    %c0 = arith.constant 0 : index
    %c0_0 = arith.constant 0 : index
    %0 = vector.load %arg1[%c0, %c0_0] : memref<8x128xbf16, #tpu.memory_space<vmem>>, vector<8x128xbf16>
    %c0_1 = arith.constant 0 : index
    %c0_2 = arith.constant 0 : index
    %1 = vector.load %arg2[%c0_1, %c0_2] : memref<128x512xbf16, #tpu.memory_space<vmem>>, vector<128x512xbf16>
    %cst = arith.constant dense<0.000000e+00> : vector<8x512xf32>
    %2 = tpu.matmul %0, %1, %cst {dimension_numbers = #tpu.dot_dimension_numbers<[1], [0], [0], [1], [0, 0, 1, 1], [], []>} : vector<8x128xbf16>, vector<128x512xbf16>, vector<8x512xf32> -> vector<8x512xf32>
    %c0_3 = arith.constant 0 : index
    %c0_4 = arith.constant 0 : index
    %3 = vector.load %arg6[%c0_3, %c0_4] : memref<10x512xf32, #tpu.memory_space<vmem>>, vector<1x512xf32>
    %c1 = arith.constant 1 : index
    %c0_5 = arith.constant 0 : index
    %4 = vector.load %arg6[%c1, %c0_5] : memref<10x512xf32, #tpu.memory_space<vmem>>, vector<1x512xf32>
    %c2 = arith.constant 2 : index
    %c0_6 = arith.constant 0 : index
    %5 = vector.load %arg6[%c2, %c0_6] : memref<10x512xf32, #tpu.memory_space<vmem>>, vector<1x512xf32>
    %6 = vector.broadcast %3 : vector<1x512xf32> to vector<8x512xf32>
    %7 = arith.addf %2, %6 : vector<8x512xf32>
    %cst_7 = arith.constant dense<0.000000e+00> : vector<8xf32>
    %8 = vector.multi_reduction <add>, %7, %cst_7 [1] : vector<8x512xf32> to vector<8xf32>
    %9 = vector.shape_cast %8 : vector<8xf32> to vector<8x1xf32>
    %cst_8 = arith.constant 5.120000e+02 : f32
    %10 = vector.broadcast %cst_8 : f32 to vector<8x1xf32>
    %11 = arith.divf %9, %10 : vector<8x1xf32>
    %12 = vector.broadcast %11 : vector<8x1xf32> to vector<8x512xf32>
    %13 = arith.subf %7, %12 : vector<8x512xf32>
    %14 = arith.mulf %13, %13 : vector<8x512xf32>
    %cst_9 = arith.constant dense<0.000000e+00> : vector<8xf32>
    %15 = vector.multi_reduction <add>, %14, %cst_9 [1] : vector<8x512xf32> to vector<8xf32>
    %16 = vector.shape_cast %15 : vector<8xf32> to vector<8x1xf32>
    %cst_10 = arith.constant 5.120000e+02 : f32
    %17 = vector.broadcast %cst_10 : f32 to vector<8x1xf32>
    %18 = arith.divf %16, %17 : vector<8x1xf32>
    %cst_11 = arith.constant 9.99999974E-6 : f32
    %19 = vector.broadcast %cst_11 : f32 to vector<8x1xf32>
    %20 = arith.addf %18, %19 : vector<8x1xf32>
    %21 = math.rsqrt %20 : vector<8x1xf32>
    %22 = vector.broadcast %4 : vector<1x512xf32> to vector<8x512xf32>
    %23 = vector.broadcast %21 : vector<8x1xf32> to vector<8x512xf32>
    %24 = arith.mulf %22, %23 : vector<8x512xf32>
    %25 = arith.mulf %13, %24 : vector<8x512xf32>
    %26 = vector.broadcast %5 : vector<1x512xf32> to vector<8x512xf32>
    %27 = arith.addf %25, %26 : vector<8x512xf32>
    %cst_12 = arith.constant 2.000000e-01 : f32
    %28 = vector.broadcast %cst_12 : f32 to vector<8x512xf32>
    %29 = arith.mulf %28, %27 : vector<8x512xf32>
    %30 = arith.maximumf %27, %29 : vector<8x512xf32>
    %31 = arith.truncf %30 : vector<8x512xf32> to vector<8x512xbf16>
    %c0_13 = arith.constant 0 : index
    %c0_14 = arith.constant 0 : index
    %32 = vector.load %arg3[%c0_13, %c0_14] : memref<512x256xbf16, #tpu.memory_space<vmem>>, vector<512x256xbf16>
    %cst_15 = arith.constant dense<0.000000e+00> : vector<8x256xf32>
    %33 = tpu.matmul %31, %32, %cst_15 {dimension_numbers = #tpu.dot_dimension_numbers<[1], [0], [0], [1], [0, 0, 1, 1], [], []>} : vector<8x512xbf16>, vector<512x256xbf16>, vector<8x256xf32> -> vector<8x256xf32>
    %c3 = arith.constant 3 : index
    %c0_16 = arith.constant 0 : index
    %34 = vector.load %arg6[%c3, %c0_16] : memref<10x512xf32, #tpu.memory_space<vmem>>, vector<1x256xf32>
    %c4 = arith.constant 4 : index
    %c0_17 = arith.constant 0 : index
    %35 = vector.load %arg6[%c4, %c0_17] : memref<10x512xf32, #tpu.memory_space<vmem>>, vector<1x256xf32>
    %c5 = arith.constant 5 : index
    %c0_18 = arith.constant 0 : index
    %36 = vector.load %arg6[%c5, %c0_18] : memref<10x512xf32, #tpu.memory_space<vmem>>, vector<1x256xf32>
    %37 = vector.broadcast %34 : vector<1x256xf32> to vector<8x256xf32>
    %38 = arith.addf %33, %37 : vector<8x256xf32>
    %cst_19 = arith.constant dense<0.000000e+00> : vector<8xf32>
    %39 = vector.multi_reduction <add>, %38, %cst_19 [1] : vector<8x256xf32> to vector<8xf32>
    %40 = vector.shape_cast %39 : vector<8xf32> to vector<8x1xf32>
    %cst_20 = arith.constant 2.560000e+02 : f32
    %41 = vector.broadcast %cst_20 : f32 to vector<8x1xf32>
    %42 = arith.divf %40, %41 : vector<8x1xf32>
    %43 = vector.broadcast %42 : vector<8x1xf32> to vector<8x256xf32>
    %44 = arith.subf %38, %43 : vector<8x256xf32>
    %45 = arith.mulf %44, %44 : vector<8x256xf32>
    %cst_21 = arith.constant dense<0.000000e+00> : vector<8xf32>
    %46 = vector.multi_reduction <add>, %45, %cst_21 [1] : vector<8x256xf32> to vector<8xf32>
    %47 = vector.shape_cast %46 : vector<8xf32> to vector<8x1xf32>
    %cst_22 = arith.constant 2.560000e+02 : f32
    %48 = vector.broadcast %cst_22 : f32 to vector<8x1xf32>
    %49 = arith.divf %47, %48 : vector<8x1xf32>
    %cst_23 = arith.constant 9.99999974E-6 : f32
    %50 = vector.broadcast %cst_23 : f32 to vector<8x1xf32>
    %51 = arith.addf %49, %50 : vector<8x1xf32>
    %52 = math.rsqrt %51 : vector<8x1xf32>
    %53 = vector.broadcast %35 : vector<1x256xf32> to vector<8x256xf32>
    %54 = vector.broadcast %52 : vector<8x1xf32> to vector<8x256xf32>
    %55 = arith.mulf %53, %54 : vector<8x256xf32>
    %56 = arith.mulf %44, %55 : vector<8x256xf32>
    %57 = vector.broadcast %36 : vector<1x256xf32> to vector<8x256xf32>
    %58 = arith.addf %56, %57 : vector<8x256xf32>
    %cst_24 = arith.constant 2.000000e-01 : f32
    %59 = vector.broadcast %cst_24 : f32 to vector<8x256xf32>
    %60 = arith.mulf %59, %58 : vector<8x256xf32>
    %61 = arith.maximumf %58, %60 : vector<8x256xf32>
    %62 = arith.truncf %61 : vector<8x256xf32> to vector<8x256xbf16>
    %c0_25 = arith.constant 0 : index
    %c0_26 = arith.constant 0 : index
    %63 = vector.load %arg4[%c0_25, %c0_26] : memref<256x128xbf16, #tpu.memory_space<vmem>>, vector<256x128xbf16>
    %cst_27 = arith.constant dense<0.000000e+00> : vector<8x128xf32>
    %64 = tpu.matmul %62, %63, %cst_27 {dimension_numbers = #tpu.dot_dimension_numbers<[1], [0], [0], [1], [0, 0, 1, 1], [], []>} : vector<8x256xbf16>, vector<256x128xbf16>, vector<8x128xf32> -> vector<8x128xf32>
    %c6 = arith.constant 6 : index
    %c0_28 = arith.constant 0 : index
    %65 = vector.load %arg6[%c6, %c0_28] : memref<10x512xf32, #tpu.memory_space<vmem>>, vector<1x128xf32>
    %c7 = arith.constant 7 : index
    %c0_29 = arith.constant 0 : index
    %66 = vector.load %arg6[%c7, %c0_29] : memref<10x512xf32, #tpu.memory_space<vmem>>, vector<1x128xf32>
    %c8 = arith.constant 8 : index
    %c0_30 = arith.constant 0 : index
    %67 = vector.load %arg6[%c8, %c0_30] : memref<10x512xf32, #tpu.memory_space<vmem>>, vector<1x128xf32>
    %68 = vector.broadcast %65 : vector<1x128xf32> to vector<8x128xf32>
    %69 = arith.addf %64, %68 : vector<8x128xf32>
    %cst_31 = arith.constant dense<0.000000e+00> : vector<8xf32>
    %70 = vector.multi_reduction <add>, %69, %cst_31 [1] : vector<8x128xf32> to vector<8xf32>
    %71 = vector.shape_cast %70 : vector<8xf32> to vector<8x1xf32>
    %cst_32 = arith.constant 1.280000e+02 : f32
    %72 = vector.broadcast %cst_32 : f32 to vector<8x1xf32>
    %73 = arith.divf %71, %72 : vector<8x1xf32>
    %74 = vector.broadcast %73 : vector<8x1xf32> to vector<8x128xf32>
    %75 = arith.subf %69, %74 : vector<8x128xf32>
    %76 = arith.mulf %75, %75 : vector<8x128xf32>
    %cst_33 = arith.constant dense<0.000000e+00> : vector<8xf32>
    %77 = vector.multi_reduction <add>, %76, %cst_33 [1] : vector<8x128xf32> to vector<8xf32>
    %78 = vector.shape_cast %77 : vector<8xf32> to vector<8x1xf32>
    %cst_34 = arith.constant 1.280000e+02 : f32
    %79 = vector.broadcast %cst_34 : f32 to vector<8x1xf32>
    %80 = arith.divf %78, %79 : vector<8x1xf32>
    %cst_35 = arith.constant 9.99999974E-6 : f32
    %81 = vector.broadcast %cst_35 : f32 to vector<8x1xf32>
    %82 = arith.addf %80, %81 : vector<8x1xf32>
    %83 = math.rsqrt %82 : vector<8x1xf32>
    %84 = vector.broadcast %66 : vector<1x128xf32> to vector<8x128xf32>
    %85 = vector.broadcast %83 : vector<8x1xf32> to vector<8x128xf32>
    %86 = arith.mulf %84, %85 : vector<8x128xf32>
    %87 = arith.mulf %75, %86 : vector<8x128xf32>
    %88 = vector.broadcast %67 : vector<1x128xf32> to vector<8x128xf32>
    %89 = arith.addf %87, %88 : vector<8x128xf32>
    %cst_36 = arith.constant 2.000000e-01 : f32
    %90 = vector.broadcast %cst_36 : f32 to vector<8x128xf32>
    %91 = arith.mulf %90, %89 : vector<8x128xf32>
    %92 = arith.maximumf %89, %91 : vector<8x128xf32>
    %93 = arith.truncf %92 : vector<8x128xf32> to vector<8x128xbf16>
    %c0_37 = arith.constant 0 : index
    %c0_38 = arith.constant 0 : index
    %94 = vector.load %arg5[%c0_37, %c0_38] : memref<128x128xbf16, #tpu.memory_space<vmem>>, vector<128x128xbf16>
    %cst_39 = arith.constant dense<0.000000e+00> : vector<8x128xf32>
    %95 = tpu.matmul %93, %94, %cst_39 {dimension_numbers = #tpu.dot_dimension_numbers<[1], [0], [0], [1], [0, 0, 1, 1], [], []>} : vector<8x128xbf16>, vector<128x128xbf16>, vector<8x128xf32> -> vector<8x128xf32>
    %c9 = arith.constant 9 : index
    %c0_40 = arith.constant 0 : index
    %96 = vector.load %arg6[%c9, %c0_40] : memref<10x512xf32, #tpu.memory_space<vmem>>, vector<1x128xf32>
    %97 = vector.broadcast %96 : vector<1x128xf32> to vector<8x128xf32>
    %98 = arith.addf %95, %97 : vector<8x128xf32>
    %c0_41 = arith.constant 0 : index
    %c0_42 = arith.constant 0 : index
    %99 = vector.load %arg7[%c0_41, %c0_42] : memref<8x128xf32, #tpu.memory_space<vmem>>, vector<8x128xf32>
    tpu.vector_store %arg7[%c0_41, %c0_42], %98 {strides = array<i32>} : memref<8x128xf32, #tpu.memory_space<vmem>>, vector<8x128xf32>,
    return
  }
  func.func @transform_0(%arg0: i32) -> (i32, i32) {
    %c0_i32 = arith.constant 0 : i32
    %c0_i32_0 = arith.constant 0 : i32
    return %arg0, %c0_i32 : i32, i32
  }
  func.func @transform_1(%arg0: i32) -> (i32, i32) {
    %c0_i32 = arith.constant 0 : i32
    %c0_i32_0 = arith.constant 0 : i32
    %c0_i32_1 = arith.constant 0 : i32
    return %c0_i32, %c0_i32_0 : i32, i32
  }
  func.func @transform_2(%arg0: i32) -> (i32, i32) {
    %c0_i32 = arith.constant 0 : i32
    %c0_i32_0 = arith.constant 0 : i32
    %c0_i32_1 = arith.constant 0 : i32
    return %c0_i32, %c0_i32_0 : i32, i32
  }
  func.func @transform_3(%arg0: i32) -> (i32, i32) {
    %c0_i32 = arith.constant 0 : i32
    %c0_i32_0 = arith.constant 0 : i32
    %c0_i32_1 = arith.constant 0 : i32
    return %c0_i32, %c0_i32_0 : i32, i32
  }
  func.func @transform_4(%arg0: i32) -> (i32, i32) {
    %c0_i32 = arith.constant 0 : i32
    %c0_i32_0 = arith.constant 0 : i32
    %c0_i32_1 = arith.constant 0 : i32
    return %c0_i32, %c0_i32_0 : i32, i32
  }
  func.func @transform_5(%arg0: i32) -> (i32, i32) {
    %c0_i32 = arith.constant 0 : i32
    %c0_i32_0 = arith.constant 0 : i32
    %c0_i32_1 = arith.constant 0 : i32
    return %c0_i32, %c0_i32_0 : i32, i32
  }
  func.func @transform_6(%arg0: i32) -> (i32, i32) {
    %c0_i32 = arith.constant 0 : i32
    %c0_i32_0 = arith.constant 0 : i32
    return %arg0, %c0_i32 : i32, i32
  }
}

</mosaic_0001>

<bundles_post_ra>
// kernel: length_estimator.1
= control target key start
LH: loop header
LB: loop body
LE: loop exit
PB: predicated region body
PF: predicated region fallthrough
CT: control target
= control target key end

     0   :  { %11 = vsyncpa [#allocation3], 0  ;;  %s1997_s0 = inlined_call_operand.vmem [shape: bf16[8,128], index: 0, kind: input, shape index: {}]   ;;  %s1998_s1 = inlined_call_operand.hbm [shape: bf16[128,512], index: 1, kind: input, shape index: {}]   ;;  %s1999_s2 = inlined_call_operand.hbm [shape: bf16[512,256], index: 2, kind: input, shape index: {}]   ;;  %s2000_s3 = inlined_call_operand.hbm [shape: bf16[256,128], index: 3, kind: input, shape index: {}]   ;;  %s2001_s4 = inlined_call_operand.hbm [shape: bf16[128,128], index: 4, kind: input, shape index: {}]   ;;  %s2002_s5 = inlined_call_operand.hbm [shape: f32[10,512], index: 5, kind: input, shape index: {}]   ;;  %s2003_s6 = inlined_call_operand.hbm [shape: f32[8,128], index: 6, kind: output, shape index: {}]  }
   0x1   :  { %12 = vsyncpa [#allocation6], 0 }
   0x2   :  { %13 = vsyncpa [#allocation9], 0 }
   0x3   :  { %14 = vsyncpa [#allocation4], 0  ;;  %s1834_s21 = smov [#allocation5]   ;;  %s1694_s25 = scalar_lea.hbm %s1999_s2, 8192 }
   0x4   :  { %s34_s22 = sshll.u32 %s1834_s21, 4  ;;  %p1695_p0 = scmp.ne.s32.totalorder %s1999_s2, %s1694_s25  ;;  %s35_s22 = int_to_ptr.vmem [resolvable:$true] %s34_s22 }
   0x5   :  { %p1698_p1 = scmp.lt.u32.totalorder %s1694_s25, %s1999_s2 }
   0x7   :  { %p1700_p2 = pnand %p1698_p1, %p1695_p0 }
   0x9   :  { %1703 = shalt.err (!%p1700_p2)
}
   0xa   :  { %s1704_s30 = scalar_lea.vmem %s35_s22, 8192  ;;  %p1709_p4 = scmp.lt.s32.totalorder %s35_s22, %s35_s22 }
   0xb   :  { %p1705_p3 = scmp.ne.s32.totalorder %s35_s22, %s1704_s30  ;;  %p1710_p5 = scmp.lt.s32.totalorder %s1704_s30, %s1704_s30 }
   0xd   :  { %p1711_p6 = por %p1710_p5, %p1709_p4 }
   0xf   :  { %p1712_p7 = pnand %p1711_p6, %p1705_p3 }
  0x11   :  { %1715 = shalt.err (!%p1712_p7)
}
  0x12   :  { %s1835_s7 = smov 128   ;;  %s1836_s8 = smov 8  }
  0x13   :  { %40 = dma.hbm_to_vmem [thread:$0]  %s1999_s2, 8192, %s35_s22, [#allocation6], %s1835_s7, %s1835_s7, %s1836_s8  }
  0x14   :  { %s1837_s11 = smov [#allocation8]   ;;  %s1838_s13 = smov [#allocation2]  }
  0x15   :  { %s58_s12 = sshll.u32 %s1837_s11, 4  ;;  %s22_s14 = sshll.u32 %s1838_s13, 4  ;;  %s59_s12 = int_to_ptr.vmem [resolvable:$true] %s58_s12  ;;  %s23_s14 = int_to_ptr.vmem [resolvable:$true] %s22_s14 }
  0x16   :  { %s1716_s17 = scalar_lea.hbm %s2001_s4, 1024 }
  0x17   :  { %p1717_p8 = scmp.ne.s32.totalorder %s2001_s4, %s1716_s17  ;;  %p1720_p9 = scmp.lt.u32.totalorder %s1716_s17, %s2001_s4 }
  0x19   :  { %p1722_p10 = pnand %p1720_p9, %p1717_p8 }
  0x1b   :  { %1725 = shalt.err (!%p1722_p10)
}
  0x1c   :  { %s1726_s2 = scalar_lea.vmem %s59_s12, 1024  ;;  %p1731_p12 = scmp.lt.s32.totalorder %s59_s12, %s59_s12 }
  0x1d   :  { %p1727_p11 = scmp.ne.s32.totalorder %s59_s12, %s1726_s2  ;;  %p1732_p13 = scmp.lt.s32.totalorder %s1726_s2, %s1726_s2 }
  0x1f   :  { %p1733_p0 = por %p1732_p13, %p1731_p12 }
  0x21   :  { %p1734_p1 = pnand %p1733_p0, %p1727_p11 }
  0x23   :  { %1737 = shalt.err (!%p1734_p1)
}
  0x24   :  { %s1839_s22 = smov 64   ;;  %s1840_s23 = smov 4  }
  0x25   :  { %64 = dma.hbm_to_vmem [thread:$0]  %s2001_s4, 1024, %s59_s12, [#allocation9], %s1839_s22, %s1839_s22, %s1840_s23  }
  0x26   :  { %s1738_s28 = scalar_lea.hbm %s1998_s1, 4096 }
  0x27   :  { %p1739_p2 = scmp.ne.s32.totalorder %s1998_s1, %s1738_s28  ;;  %p1742_p3 = scmp.lt.u32.totalorder %s1738_s28, %s1998_s1 }
  0x29   :  { %p1744_p4 = pnand %p1742_p3, %p1739_p2 }
  0x2b   :  { %1747 = shalt.err (!%p1744_p4)
}
  0x2c   :  { %s1748_s9 = scalar_lea.vmem %s23_s14, 4096  ;;  %p1753_p6 = scmp.lt.s32.totalorder %s23_s14, %s23_s14 }
  0x2d   :  { %p1749_p5 = scmp.ne.s32.totalorder %s23_s14, %s1748_s9  ;;  %p1754_p7 = scmp.lt.s32.totalorder %s1748_s9, %s1748_s9 }
  0x2f   :  { %p1755_p8 = por %p1754_p7, %p1753_p6 }
  0x31   :  { %p1756_p9 = pnand %p1755_p8, %p1749_p5 }
  0x33   :  { %1759 = shalt.err (!%p1756_p9)
}
  0x34   :  { %s1841_s4 = smov 256   ;;  %s1842_s10 = smov 16  }
  0x35   :  { %28 = dma.hbm_to_vmem [thread:$0]  %s1998_s1, 4096, %s23_s14, [#allocation3], %s1841_s4, %s1841_s4, %s1842_s10  }
  0x36   :  { %s1843_s13 = smov [#allocation7]   ;;  %s1844_s16 = smov [#allocation10]  }
  0x37   :  { %s46_s15 = sshll.u32 %s1843_s13, 4  ;;  %s70_s17 = sshll.u32 %s1844_s16, 4  ;;  %s47_s15 = int_to_ptr.vmem [resolvable:$true] %s46_s15  ;;  %s71_s17 = int_to_ptr.vmem [resolvable:$true] %s70_s17 }
  0x38   :  { %s1760_s20 = scalar_lea.hbm %s2000_s3, 2048 }
  0x39   :  { %p1761_p10 = scmp.ne.s32.totalorder %s2000_s3, %s1760_s20  ;;  %p1764_p11 = scmp.lt.u32.totalorder %s1760_s20, %s2000_s3 }
  0x3b   :  { %p1766_p12 = pnand %p1764_p11, %p1761_p10 }
  0x3d   :  { %1769 = shalt.err (!%p1766_p12)
}
  0x3e   :  { %s1770_s1 = scalar_lea.vmem %s47_s15, 2048  ;;  %p1775_p0 = scmp.lt.s32.totalorder %s47_s15, %s47_s15 }
  0x3f   :  { %p1771_p13 = scmp.ne.s32.totalorder %s47_s15, %s1770_s1  ;;  %p1776_p1 = scmp.lt.s32.totalorder %s1770_s1, %s1770_s1 }
  0x41   :  { %p1777_p2 = por %p1776_p1, %p1775_p0 }
  0x43   :  { %p1778_p3 = pnand %p1777_p2, %p1771_p13 }
  0x45   :  { %1781 = shalt.err (!%p1778_p3)
}
  0x46   :  { %52 = dma.hbm_to_vmem [thread:$0]  %s2000_s3, 2048, %s47_s15, [#allocation6], %s1839_s22, %s1839_s22, %s1840_s23  }
  0x47   :  { %s1782_s29 = scalar_lea.hbm %s2002_s5, 1024 }
  0x48   :  { %p1783_p4 = scmp.ne.s32.totalorder %s2002_s5, %s1782_s29  ;;  %p1786_p5 = scmp.lt.u32.totalorder %s1782_s29, %s2002_s5 }
  0x4a   :  { %p1788_p6 = pnand %p1786_p5, %p1783_p4 }
  0x4c   :  { %1791 = shalt.err (!%p1788_p6)
}
  0x4d   :  { %s1792_s4 = scalar_lea.vmem %s71_s17, 1024  ;;  %p1797_p8 = scmp.lt.s32.totalorder %s71_s17, %s71_s17 }
  0x4e   :  { %p1793_p7 = scmp.ne.s32.totalorder %s71_s17, %s1792_s4  ;;  %p1798_p9 = scmp.lt.s32.totalorder %s1792_s4, %s1792_s4 }
  0x50   :  { %p1799_p10 = por %p1798_p9, %p1797_p8 }
  0x52   :  { %p1800_p11 = pnand %p1799_p10, %p1793_p7 }
  0x54   :  { %1803 = shalt.err (!%p1800_p11)
}
  0x55   :  { %s1845_s3 = smov 512   ;;  %s1846_s22 = smov 32  }
  0x56   :  { %76 = dma.hbm_to_vmem [thread:$0]  %s2002_s5, 1024, %s71_s17, [#allocation9], %s1845_s3, %s1845_s3, %s1846_s22  }
  0x57   :  { %1826 = dma.done.wait [#allocation3], 4096  }
  0x58   :  { %1827 = vsyncadd [#allocation3], 4294963200 }
  0x59   :  { %1828 = dma.done.wait [#allocation6], 10240  }
  0x5a   :  { %1829 = vsyncadd [#allocation6], 4294957056 }
  0x5b   :  { %1830 = dma.done.wait [#allocation9], 2048  }
  0x5c   :  { %1831 = vsyncadd [#allocation9], 4294965248  ;;  %v1847_v0 = vmov 0   ;;  %v1520_v1 = vld [vmem:[#allocation2 + $0x4] ss:$16 sps:$4 sm:$0xff]   ;;  %v132_v38 = vlaneseq  ;;  %vm1849_vm0 = vmmov 0  }
  0x5d   :  { %344 = vmatprep.mubr.bf16.mxu1 %v1847_v0  ;;  %v1522_v2 = vld [vmem:[#allocation2] ss:$16 sps:$4 sm:$0xff]   ;;  %312 = vmatprep.subr.bf16.mxu1 %v1520_v1  ;;  %v1523_v3 = vld [vmem:[#allocation2 + $0x24] ss:$16 sps:$4 sm:$0xff]   ;;  %v1546_v17 = vld [vmem:[#allocation2 + $0xc] ss:$16 sps:$4 sm:$0xff]  }
  0x5e   :  { %313 = vmatpush1.bf16.msra.mxu1 %v1522_v2  ;;  %v1525_v4 = vld [vmem:[#allocation2 + $0x20] ss:$16 sps:$4 sm:$0xff]   ;;  %v1526_v5 = vld [vmem:[#allocation2 + $0x44] ss:$16 sps:$4 sm:$0xff]   ;;  %v1544_v19 = vld [vmem:[#allocation2 + $0x8] ss:$16 sps:$4 sm:$0xff]  }
  0x5f   :  { %314 = vmatprep.subr.bf16.mxu1 %v1523_v3  ;;  %v1528_v6 = vld [vmem:[#allocation2 + $0x40] ss:$16 sps:$4 sm:$0xff]   ;;  %v1529_v7 = vld [vmem:[#allocation2 + $0x64] ss:$16 sps:$4 sm:$0xff]   ;;  %v1549_v20 = vld [vmem:[#allocation2 + $0x2c] ss:$16 sps:$4 sm:$0xff]  }
  0x60   :  { %v1531_v8 = vld [vmem:[#allocation2 + $0x60] ss:$16 sps:$4 sm:$0xff]   ;;  %v1532_v9 = vld [vmem:[#allocation2 + $0x84] ss:$16 sps:$4 sm:$0xff]   ;;  %v1547_v21 = vld [vmem:[#allocation2 + $0x28] ss:$16 sps:$4 sm:$0xff]  }
  0x61   :  { %v1534_v10 = vld [vmem:[#allocation2 + $0x80] ss:$16 sps:$4 sm:$0xff]   ;;  %v1535_v11 = vld [vmem:[#allocation2 + $0xa4] ss:$16 sps:$4 sm:$0xff]   ;;  %v1552_v22 = vld [vmem:[#allocation2 + $0x4c] ss:$16 sps:$4 sm:$0xff]  }
  0x62   :  { %315 = vmatpush1.bf16.msra.mxu1 %v1525_v4  ;;  %v1537_v12 = vld [vmem:[#allocation2 + $0xa0] ss:$16 sps:$4 sm:$0xff]   ;;  %v1538_v13 = vld [vmem:[#allocation2 + $0xc4] ss:$16 sps:$4 sm:$0xff]   ;;  %v1550_v23 = vld [vmem:[#allocation2 + $0x48] ss:$16 sps:$4 sm:$0xff]  }
  0x63   :  { %316 = vmatprep.subr.bf16.mxu1 %v1526_v5  ;;  %v1540_v14 = vld [vmem:[#allocation2 + $0xc0] ss:$16 sps:$4 sm:$0xff]   ;;  %v1541_v15 = vld [vmem:[#allocation2 + $0xe4] ss:$16 sps:$4 sm:$0xff]   ;;  %v1555_v24 = vld [vmem:[#allocation2 + $0x6c] ss:$16 sps:$4 sm:$0xff]  }
  0x64   :  { %v1543_v16 = vld [vmem:[#allocation2 + $0xe0] ss:$16 sps:$4 sm:$0xff]   ;;  %v1553_v25 = vld [vmem:[#allocation2 + $0x68] ss:$16 sps:$4 sm:$0xff]   ;;  %v1558_v26 = vld [vmem:[#allocation2 + $0x8c] ss:$16 sps:$4 sm:$0xff]  }
  0x65   :  { %v93_v18 = vld [vmem:[%s1997_s0] sm:$0xf]  ;;  %v1556_v27 = vld [vmem:[#allocation2 + $0x88] ss:$16 sps:$4 sm:$0xff]   ;;  %v1561_v28 = vld [vmem:[#allocation2 + $0xac] ss:$16 sps:$4 sm:$0xff]  }
  0x66   :  { %317 = vmatpush1.bf16.msra.mxu1 %v1528_v6  ;;  %v1559_v29 = vld [vmem:[#allocation2 + $0xa8] ss:$16 sps:$4 sm:$0xff]   ;;  %v1564_v30 = vld [vmem:[#allocation2 + $0xcc] ss:$16 sps:$4 sm:$0xff]   ;;  %v133_v39 = vshrl.u32 %v132_v38, 7  ;;  %s1850_s0 = smov [#allocation11]  }
  0x67   :  { %318 = vmatprep.subr.bf16.mxu1 %v1529_v7  ;;  %v1562_v31 = vld [vmem:[#allocation2 + $0xc8] ss:$16 sps:$4 sm:$0xff]   ;;  %v1567_v32 = vld [vmem:[#allocation2 + $0xec] ss:$16 sps:$4 sm:$0xff]   ;;  %s1315_s12 = sshll.u32 %s1850_s0, 4  ;;  %s1316_s12 = int_to_ptr.vmem [resolvable:$true] %s1315_s12 }
  0x68   :  { %v1565_v33 = vld [vmem:[#allocation2 + $0xe8] ss:$16 sps:$4 sm:$0xff]   ;;  %v1955_v40 = vsub.s32 0, %v133_v39  ;;  %v1957_v41 = vsub.s32 1, %v133_v39  ;;  %v1961_v45 = vsub.s32 2, %v133_v39  ;;  %v1963_v46 = vsub.s32 3, %v133_v39  ;;  %p1809_p13 = scmp.lt.s32.totalorder %s1316_s12, %s1316_s12 }
  0x69   :  { %v126_v42 = vld [vmem:[#allocation10] ss:$8 sm:$0xf]  ;;  %v1568_v60 = vld [vmem:[#allocation5 + $0x4] ss:$8 sps:$4 sm:$0xff]   ;;  %s1804_s13 = scalar_lea.vmem %s1316_s12, 128 }
  0x6a   :  { %319 = vmatpush1.bf16.msra.mxu1 %v1531_v8  ;;  %v135_v43 = vrot.slane %v126_v42, %v1955_v40  ;;  %v139_v44 = vrot.slane %v126_v42, %v1957_v41  ;;  %v143_v49 = vrot.slane %v126_v42, %v1961_v45  ;;  %v147_v50 = vrot.slane %v126_v42, %v1963_v46  ;;  %v1570_v61 = vld [vmem:[#allocation5] ss:$8 sps:$4 sm:$0xff]   ;;  %v1571_v62 = vld [vmem:[#allocation5 + $0x14] ss:$8 sps:$4 sm:$0xff]   ;;  %v1573_v63 = vld [vmem:[#allocation5 + $0x10] ss:$8 sps:$4 sm:$0xff]   ;;  %p1805_p12 = scmp.ne.s32.totalorder %s1316_s12, %s1804_s13  ;;  %p1810_p0 = scmp.lt.s32.totalorder %s1804_s13, %s1804_s13 }
  0x6b   :  { %320 = vmatprep.subr.bf16.mxu1 %v1532_v9  ;;  %884 = vmatprep.subr.bf16.mxu0 %v1568_v60  ;;  %v1576_v1 = vld [vmem:[#allocation5 + $0x20] ss:$8 sps:$4 sm:$0xff]   ;;  %v1577_v2 = vld [vmem:[#allocation5 + $0x34] ss:$8 sps:$4 sm:$0xff]   ;;  %v1579_v3 = vld [vmem:[#allocation5 + $0x30] ss:$8 sps:$4 sm:$0xff]  }
  0x6c   :  { %885 = vmatpush1.bf16.msra.mxu0 %v1570_v61  ;;  %v1580_v4 = vld [vmem:[#allocation5 + $0x44] ss:$8 sps:$4 sm:$0xff]   ;;  %v1582_v5 = vld [vmem:[#allocation5 + $0x40] ss:$8 sps:$4 sm:$0xff]   ;;  %v1583_v6 = vld [vmem:[#allocation5 + $0x54] ss:$8 sps:$4 sm:$0xff]   ;;  %p1811_p1 = por %p1810_p0, %p1809_p13 }
  0x6d   :  { %886 = vmatprep.subr.bf16.mxu0 %v1571_v62  ;;  %v1585_v7 = vld [vmem:[#allocation5 + $0x50] ss:$8 sps:$4 sm:$0xff]   ;;  %v1586_v8 = vld [vmem:[#allocation5 + $0x64] ss:$8 sps:$4 sm:$0xff]   ;;  %v1588_v9 = vld [vmem:[#allocation5 + $0x60] ss:$8 sps:$4 sm:$0xff]  }
  0x6e   :  { %321 = vmatpush1.bf16.msra.mxu1 %v1534_v10  ;;  %v1589_v10 = vld [vmem:[#allocation5 + $0x74] ss:$8 sps:$4 sm:$0xff]   ;;  %v1612_v38 = vld [vmem:[#allocation5 + $0xe0] ss:$8 sps:$4 sm:$0xff]   ;;  %v1615_v42 = vld [vmem:[#allocation5 + $0xf0] ss:$8 sps:$4 sm:$0xff]   ;;  %p1812_p2 = pnand %p1811_p1, %p1805_p12 }
  0x6f   :  { %322 = vmatprep.subr.bf16.mxu1 %v1535_v11  ;;  %v1591_v11 = vld [vmem:[#allocation5 + $0x70] ss:$8 sps:$4 sm:$0xff]   ;;  %v1613_v39 = vld [vmem:[#allocation5 + $0xf4] ss:$8 sps:$4 sm:$0xff]  }
  0x70   :  { %887 = vmatpush1.bf16.msra.mxu0 %v1573_v63 }
  0x72   :  { %323 = vmatpush1.bf16.msra.mxu1 %v1537_v12  ;;  %v1592_v12 = vld [vmem:[#allocation5 + $0x84] ss:$8 sps:$4 sm:$0xff]  }
  0x73   :  { %324 = vmatprep.subr.bf16.mxu1 %v1538_v13  ;;  %v1594_v13 = vld [vmem:[#allocation5 + $0x80] ss:$8 sps:$4 sm:$0xff]  }
  0x76   :  { %325 = vmatpush1.bf16.msra.mxu1 %v1540_v14  ;;  %v1595_v14 = vld [vmem:[#allocation5 + $0x94] ss:$8 sps:$4 sm:$0xff]  }
  0x77   :  { %326 = vmatprep.subr.bf16.mxu1 %v1541_v15 }
  0x7a   :  { %327 = vmatpush1.bf16.msra.mxu1 %v1543_v16 }
  0x7b   :  { %353 = vmatprep.subr.bf16.mxu1 %v1546_v17 }
  0x7d   :  { %345 = vmatmul.mubr.bf16.vlgmr.msra.gmra.mrb[0].mxu1 %v93_v18 }
  0x7e   :  { %354 = vmatpush1.bf16.msra.mxu1 %v1544_v19  ;;  %385 = vmatprep.mubr.bf16.mxu1 %v1847_v0  ;;  %v1574_v0 = vld [vmem:[#allocation5 + $0x24] ss:$8 sps:$4 sm:$0xff]  }
  0x7f   :  { %355 = vmatprep.subr.bf16.mxu1 %v1549_v20  ;;  %888 = vmatprep.subr.bf16.mxu0 %v1574_v0 }
  0x80   :  { %889 = vmatpush1.bf16.msra.mxu0 %v1576_v1 }
  0x81   :  { %890 = vmatprep.subr.bf16.mxu0 %v1577_v2 }
  0x82   :  { %356 = vmatpush1.bf16.msra.mxu1 %v1547_v21 }
  0x83   :  { %357 = vmatprep.subr.bf16.mxu1 %v1552_v22 }
  0x84   :  { %891 = vmatpush1.bf16.msra.mxu0 %v1579_v3 }
  0x85   :  { %892 = vmatprep.subr.bf16.mxu0 %v1580_v4 }
  0x86   :  { %358 = vmatpush1.bf16.msra.mxu1 %v1550_v23 }
  0x87   :  { %359 = vmatprep.subr.bf16.mxu1 %v1555_v24 }
  0x88   :  { %893 = vmatpush1.bf16.msra.mxu0 %v1582_v5 }
  0x89   :  { %894 = vmatprep.subr.bf16.mxu0 %v1583_v6 }
  0x8a   :  { %360 = vmatpush1.bf16.msra.mxu1 %v1553_v25 }
  0x8b   :  { %361 = vmatprep.subr.bf16.mxu1 %v1558_v26 }
  0x8c   :  { %895 = vmatpush1.bf16.msra.mxu0 %v1585_v7 }
  0x8d   :  { %896 = vmatprep.subr.bf16.mxu0 %v1586_v8 }
  0x8e   :  { %362 = vmatpush1.bf16.msra.mxu1 %v1556_v27 }
  0x8f   :  { %363 = vmatprep.subr.bf16.mxu1 %v1561_v28  ;;  %v1597_v28 = vld [vmem:[#allocation5 + $0x90] ss:$8 sps:$4 sm:$0xff]  }
  0x90   :  { %897 = vmatpush1.bf16.msra.mxu0 %v1588_v9 }
  0x91   :  { %898 = vmatprep.subr.bf16.mxu0 %v1589_v10 }
  0x92   :  { %364 = vmatpush1.bf16.msra.mxu1 %v1559_v29  ;;  %v1598_v29 = vld [vmem:[#allocation5 + $0xa4] ss:$8 sps:$4 sm:$0xff]  }
  0x93   :  { %365 = vmatprep.subr.bf16.mxu1 %v1564_v30  ;;  %v1600_v30 = vld [vmem:[#allocation5 + $0xa0] ss:$8 sps:$4 sm:$0xff]  }
  0x94   :  { %899 = vmatpush1.bf16.msra.mxu0 %v1591_v11 }
  0x95   :  { %900 = vmatprep.subr.bf16.mxu0 %v1592_v12 }
  0x96   :  { %366 = vmatpush1.bf16.msra.mxu1 %v1562_v31  ;;  %v1601_v31 = vld [vmem:[#allocation5 + $0xb4] ss:$8 sps:$4 sm:$0xff]  }
  0x97   :  { %367 = vmatprep.subr.bf16.mxu1 %v1567_v32  ;;  %v1603_v32 = vld [vmem:[#allocation5 + $0xb0] ss:$8 sps:$4 sm:$0xff]  }
  0x98   :  { %901 = vmatpush1.bf16.msra.mxu0 %v1594_v13  ;;  %v1616_v13 = vld [vmem:[#allocation5 + $0x100] ss:$8 sps:$4 sm:$0xff]  }
  0x99   :  { %902 = vmatprep.subr.bf16.mxu0 %v1595_v14 }
  0x9a   :  { %368 = vmatpush1.bf16.msra.mxu1 %v1565_v33  ;;  %v1604_v33 = vld [vmem:[#allocation5 + $0xc4] ss:$8 sps:$4 sm:$0xff]  }
  0x9c   :  { %903 = vmatpush1.bf16.msra.mxu0 %v1597_v28  ;;  %v1639_v28 = vld [vmem:[#allocation5 + $0x174] ss:$8 sps:$4 sm:$0xff]  }
  0x9d   :  { %386 = vmatmul.mubr.bf16.vlgmr.msra.gmra.mrb[4].mxu1 %v93_v18  ;;  %904 = vmatprep.subr.bf16.mxu0 %v1598_v29  ;;  %v1637_v29 = vld [vmem:[#allocation5 + $0x170] ss:$8 sps:$4 sm:$0xff]  }
  0xa0   :  { %905 = vmatpush1.bf16.msra.mxu0 %v1600_v30  ;;  %v1642_v30 = vld [vmem:[#allocation5 + $0x184] ss:$8 sps:$4 sm:$0xff]  }
  0xa1   :  { %906 = vmatprep.subr.bf16.mxu0 %v1601_v31  ;;  %v1640_v31 = vld [vmem:[#allocation5 + $0x180] ss:$8 sps:$4 sm:$0xff]  }
  0xa4   :  { %907 = vmatpush1.bf16.msra.mxu0 %v1603_v32  ;;  %v1645_v32 = vld [vmem:[#allocation5 + $0x194] ss:$8 sps:$4 sm:$0xff]  }
  0xa5   :  { %908 = vmatprep.subr.bf16.mxu0 %v1604_v33  ;;  %v1643_v33 = vld [vmem:[#allocation5 + $0x190] ss:$8 sps:$4 sm:$0xff]  }
 0x150   :  { %v346_v34 = vpop.f32.mrb[0].mxu1 }
 0x151   :  { %v348_v35 = vpop.f32.mrb[1].mxu1  ;;  %v347_v47 = vadd.f32 %v346_v34, %v135_v43  ;;  %v1606_v34 = vld [vmem:[#allocation5 + $0xc0] ss:$8 sps:$4 sm:$0xff]   ;;  %v1618_v43 = vld [vmem:[#allocation5 + $0x104] ss:$8 sps:$4 sm:$0xff]  }
 0x152   :  { %v350_v36 = vpop.f32.mrb[2].mxu1  ;;  %v349_v48 = vadd.f32 %v348_v35, %v139_v44  ;;  %v1607_v35 = vld [vmem:[#allocation5 + $0xd4] ss:$8 sps:$4 sm:$0xff]   ;;  %909 = vmatpush1.bf16.msra.mxu0 %v1606_v34  ;;  %v1648_v34 = vld [vmem:[#allocation5 + $0x1a4] ss:$8 sps:$4 sm:$0xff]  }
 0x153   :  { %v351_v37 = vpop.f32.mrb[3].mxu1  ;;  %v1609_v36 = vld [vmem:[#allocation5 + $0xd0] ss:$8 sps:$4 sm:$0xff]   ;;  %910 = vmatprep.subr.bf16.mxu0 %v1607_v35  ;;  %v1646_v35 = vld [vmem:[#allocation5 + $0x1a0] ss:$8 sps:$4 sm:$0xff]  }
 0x154   :  { %v394_v52 = vadd.f32 %v349_v48, %v347_v47  ;;  %v1610_v37 = vld [vmem:[#allocation5 + $0xe4] ss:$8 sps:$4 sm:$0xff]  }
 0x156   :  { %911 = vmatpush1.bf16.msra.mxu0 %v1609_v36  ;;  %v1651_v36 = vld [vmem:[#allocation5 + $0x1b4] ss:$8 sps:$4 sm:$0xff]  }
 0x157   :  { %912 = vmatprep.subr.bf16.mxu0 %v1610_v37  ;;  %v1649_v37 = vld [vmem:[#allocation5 + $0x1b0] ss:$8 sps:$4 sm:$0xff]  }
 0x15a   :  { %913 = vmatpush1.bf16.msra.mxu0 %v1612_v38  ;;  %v1654_v38 = vld [vmem:[#allocation5 + $0x1c4] ss:$8 sps:$4 sm:$0xff]  }
 0x15b   :  { %914 = vmatprep.subr.bf16.mxu0 %v1613_v39  ;;  %v1652_v39 = vld [vmem:[#allocation5 + $0x1c0] ss:$8 sps:$4 sm:$0xff]  }
 0x15e   :  { %915 = vmatpush1.bf16.msra.mxu0 %v1615_v42  ;;  %v1657_v42 = vld [vmem:[#allocation5 + $0x1d4] ss:$8 sps:$4 sm:$0xff]  }
 0x15f   :  { %925 = vmatprep.subr.bf16.mxu0 %v1618_v43  ;;  %v1655_v43 = vld [vmem:[#allocation5 + $0x1d0] ss:$8 sps:$4 sm:$0xff]  }
 0x170   :  { %v387_v51 = vpop.f32.mrb[4].mxu1 }
 0x171   :  { %v388_v53 = vadd.f32 %v387_v51, %v143_v49  ;;  %v389_v54 = vpop.f32.mrb[5].mxu1  ;;  %v128_v49 = vld [vmem:[#allocation10 + $0x1] ss:$8 sm:$0xf] }
 0x172   :  { %v390_v55 = vadd.f32 %v389_v54, %v147_v50  ;;  %v391_v56 = vpop.f32.mrb[6].mxu1  ;;  %v429_v50 = vrot.slane %v128_v49, %v1961_v45  ;;  %v433_v51 = vrot.slane %v128_v49, %v1963_v46  ;;  %v421_v54 = vrot.slane %v128_v49, %v1955_v40 }
 0x173   :  { %v392_v57 = vpop.f32.mrb[7].mxu1  ;;  %v395_v58 = vadd.f32 %v394_v52, %v388_v53  ;;  %v130_v52 = vld [vmem:[#allocation10 + $0x2] ss:$8 sm:$0xf] }
 0x174   :  { %v454_v56 = vrot.slane %v130_v52, %v1957_v41  ;;  %v450_v57 = vrot.slane %v130_v52, %v1955_v40 }
 0x175   :  { %v396_v59 = vadd.f32 %v395_v58, %v390_v55  ;;  %v462_v58 = vrot.slane %v130_v52, %v1963_v46 }
 0x177   :  { %397 = vadd.xlane.f32.xlu0 %v396_v59  ;;  %v458_v59 = vrot.slane %v130_v52, %v1961_v45 }
 0x204   :  { %v398_v15 = vpop.xlane.xlu0 %397 }
 0x205   :  { %v400_v16 = vmul.f32 0.001953125, %v398_v15  ;;  %v1621_v15 = vld [vmem:[#allocation5 + $0x114] ss:$8 sps:$4 sm:$0xff]  }
 0x207   :  { %v401_v17 = vsub.f32 %v347_v47, %v400_v16  ;;  %v402_v18 = vsub.f32 %v349_v48, %v400_v16  ;;  %v403_v19 = vsub.f32 %v388_v53, %v400_v16  ;;  %v404_v20 = vsub.f32 %v390_v55, %v400_v16 }
 0x208   :  { %v425_v53 = vrot.slane %v128_v49, %v1957_v41 }
 0x209   :  { %v405_v21 = vmul.f32 %v401_v17, %v401_v17  ;;  %v406_v22 = vmul.f32 %v402_v18, %v402_v18  ;;  %v407_v23 = vmul.f32 %v403_v19, %v403_v19  ;;  %v408_v25 = vmul.f32 %v404_v20, %v404_v20 }
 0x20b   :  { %v409_v24 = vadd.f32 %v406_v22, %v405_v21  ;;  %v1625_v21 = vld [vmem:[#allocation5 + $0x130] ss:$8 sps:$4 sm:$0xff]   ;;  %v1630_v22 = vld [vmem:[#allocation5 + $0x144] ss:$8 sps:$4 sm:$0xff]  }
 0x20d   :  { %v410_v26 = vadd.f32 %v409_v24, %v407_v23  ;;  %v1628_v23 = vld [vmem:[#allocation5 + $0x140] ss:$8 sps:$4 sm:$0xff]   ;;  %v1633_v24 = vld [vmem:[#allocation5 + $0x154] ss:$8 sps:$4 sm:$0xff]  }
 0x20f   :  { %v411_v27 = vadd.f32 %v410_v26, %v408_v25  ;;  %v1631_v25 = vld [vmem:[#allocation5 + $0x150] ss:$8 sps:$4 sm:$0xff]   ;;  %v1636_v26 = vld [vmem:[#allocation5 + $0x164] ss:$8 sps:$4 sm:$0xff]  }
 0x211   :  { %412 = vadd.xlane.f32.xlu0 %v411_v27  ;;  %v1634_v27 = vld [vmem:[#allocation5 + $0x160] ss:$8 sps:$4 sm:$0xff]  }
 0x29e   :  { %v413_v44 = vpop.xlane.xlu0 %412 }
 0x29f   :  { %v414_v47 = vmul.f32 0.001953125, %v413_v44  ;;  %v1660_v44 = vld [vmem:[#allocation5 + $0x1e4] ss:$8 sps:$4 sm:$0xff]  }
 0x2a1   :  { %v415_v48 = vadd.f32 1e-05, %v414_v47  ;;  %v1658_v47 = vld [vmem:[#allocation5 + $0x1e0] ss:$8 sps:$4 sm:$0xff]  }
 0x2a3   :  { %1688 = vrsqrt.f32 %v415_v48  ;;  %v1663_v48 = vld [vmem:[#allocation5 + $0x1f4] ss:$8 sps:$4 sm:$0xff]  }
 0x2ad   :  { %v1689_v55 = vpop.eup %1688 }
 0x2ae   :  { %v439_v60 = vmul.f32 %v1689_v55, %v425_v53  ;;  %v438_v61 = vmul.f32 %v1689_v55, %v421_v54  ;;  %v441_v62 = vmul.f32 %v1689_v55, %v433_v51  ;;  %v440_v63 = vmul.f32 %v1689_v55, %v429_v50  ;;  %v1661_v50 = vld [vmem:[#allocation5 + $0x1f0] ss:$8 sps:$4 sm:$0xff]   ;;  %v548_v53 = vld [vmem:[#allocation10 + $0x3] ss:$8 sm:$0x3] }
 0x2af   :  { %v557_v54 = vrot.slane %v548_v53, %v1955_v40  ;;  %v561_v55 = vrot.slane %v548_v53, %v1957_v41 }
 0x2b0   :  { %v443_v0 = vmul.f32 %v439_v60, %v402_v18  ;;  %v442_v1 = vmul.f32 %v438_v61, %v401_v17  ;;  %v445_v2 = vmul.f32 %v441_v62, %v404_v20  ;;  %v444_v3 = vmul.f32 %v440_v63, %v403_v19  ;;  %v1619_v17 = vld [vmem:[#allocation5 + $0x110] ss:$8 sps:$4 sm:$0xff]   ;;  %v1624_v18 = vld [vmem:[#allocation5 + $0x124] ss:$8 sps:$4 sm:$0xff]   ;;  %v1622_v19 = vld [vmem:[#allocation5 + $0x120] ss:$8 sps:$4 sm:$0xff]  }
 0x2b1   :  { %v1627_v20 = vld [vmem:[#allocation5 + $0x134] ss:$8 sps:$4 sm:$0xff]   ;;  %v1664_v63 = vld [vmem:[#allocation7 + $0x40] sm:$0xff]  }
 0x2b2   :  { %v468_v4 = vadd.f32 %v454_v56, %v443_v0  ;;  %v467_v5 = vadd.f32 %v450_v57, %v442_v1  ;;  %v470_v6 = vadd.f32 %v462_v58, %v445_v2  ;;  %v1975_v7 = vadd.f32 %v458_v59, %v444_v3  ;;  %v1665_v0 = vld [vmem:[#allocation7] sm:$0xff]   ;;  %1446 = vmatprep.subr.bf16.mxu1 %v1664_v63  ;;  %v1687_v63 = vld [vmem:[#allocation8 + $0x38] sm:$0xff]  }
 0x2b3   :  { %1447 = vmatpush3.bf16.msra.mxu1 %v1665_v0 }
 0x2b4   :  { %v472_v8 = vmul.f32 0.2, %v468_v4  ;;  %v471_v9 = vmul.f32 0.2, %v467_v5  ;;  %v474_v10 = vmul.f32 0.2, %v470_v6 }
 0x2b5   :  { %v473_v49 = vmul.f32 0.2, %v1975_v7 }
 0x2b6   :  { %v476_v11 = vmax.f32 %v468_v4, %v472_v8  ;;  %v475_v46 = vmax.f32 %v467_v5, %v471_v9  ;;  %v478_v12 = vmax.f32 %v470_v6, %v474_v10  ;;  %v1666_v8 = vld [vmem:[#allocation7 + $0x48] sm:$0xff]   ;;  %v1668_v10 = vld [vmem:[#allocation7 + $0x50] sm:$0xff]  }
 0x2b7   :  { %v477_v51 = vmax.f32 %v1975_v7, %v473_v49  ;;  %v1667_v9 = vld [vmem:[#allocation7 + $0x8] sm:$0xff]   ;;  %1448 = vmatprep.subr.bf16.mxu1 %v1666_v8 }
 0x2b8   :  { %v480_v45 = vpack.c.bf16 %v476_v11, %v476_v11  ;;  %v479_v14 = vpack.c.bf16 %v475_v46, %v475_v46  ;;  %v482_v16 = vpack.c.bf16 %v478_v12, %v478_v12  ;;  %1449 = vmatpush3.bf16.msra.mxu1 %v1667_v9  ;;  %v1669_v11 = vld [vmem:[#allocation7 + $0x10] sm:$0xff]   ;;  %v1670_v46 = vld [vmem:[#allocation7 + $0x58] sm:$0xff]  }
 0x2b9   :  { %v481_v52 = vpack.c.bf16 %v477_v51, %v477_v51  ;;  %1450 = vmatprep.subr.bf16.mxu1 %v1668_v10  ;;  %v1671_v12 = vld [vmem:[#allocation7 + $0x18] sm:$0xff]  }
 0x2ba   :  { %916 = vmatprep.mubr.bf16.mxu0 %v480_v45  ;;  %v1672_v45 = vld [vmem:[#allocation7 + $0x60] sm:$0xff]  }
 0x2bb   :  { %917 = vmatmul.mubr.bf16.vlgmr.msra.gmra.mrb[0].mxu0 %v479_v14  ;;  %v1674_v14 = vld [vmem:[#allocation7 + $0x68] sm:$0xff]  }
 0x2bc   :  { %926 = vmatpush1.bf16.msra.mxu0 %v1616_v13  ;;  %957 = vmatprep.mubr.bf16.mxu0 %v482_v16  ;;  %v1673_v13 = vld [vmem:[#allocation7 + $0x20] sm:$0xff]   ;;  %v1676_v16 = vld [vmem:[#allocation7 + $0x70] sm:$0xff]  }
 0x2bd   :  { %927 = vmatprep.subr.bf16.mxu0 %v1621_v15  ;;  %1451 = vmatpush3.bf16.msra.mxu1 %v1669_v11  ;;  %v1675_v15 = vld [vmem:[#allocation7 + $0x28] sm:$0xff]  }
 0x2be   :  { %1452 = vmatprep.subr.bf16.mxu1 %v1670_v46  ;;  %v1219_v46 = vld [vmem:[#allocation10 + $0x21] ss:$0 sm:$0xff] }
 0x2c0   :  { %928 = vmatpush1.bf16.msra.mxu0 %v1619_v17  ;;  %v1677_v17 = vld [vmem:[#allocation7 + $0x30] sm:$0xff]  }
 0x2c1   :  { %929 = vmatprep.subr.bf16.mxu0 %v1624_v18  ;;  %1453 = vmatpush3.bf16.msra.mxu1 %v1671_v12  ;;  %v1678_v18 = vld [vmem:[#allocation7 + $0x78] sm:$0xff]  }
 0x2c2   :  { %1454 = vmatprep.subr.bf16.mxu1 %v1672_v45 }
 0x2c4   :  { %930 = vmatpush1.bf16.msra.mxu0 %v1622_v19  ;;  %v1679_v19 = vld [vmem:[#allocation7 + $0x38] sm:$0xff]  }
 0x2c5   :  { %931 = vmatprep.subr.bf16.mxu0 %v1627_v20  ;;  %1455 = vmatpush3.bf16.msra.mxu1 %v1673_v13 }
 0x2c6   :  { %1456 = vmatprep.subr.bf16.mxu1 %v1674_v14 }
 0x2c8   :  { %932 = vmatpush1.bf16.msra.mxu0 %v1625_v21 }
 0x2c9   :  { %933 = vmatprep.subr.bf16.mxu0 %v1630_v22  ;;  %1457 = vmatpush3.bf16.msra.mxu1 %v1675_v15 }
 0x2ca   :  { %1458 = vmatprep.subr.bf16.mxu1 %v1676_v16 }
 0x2cc   :  { %934 = vmatpush1.bf16.msra.mxu0 %v1628_v23  ;;  %v550_v23 = vld [vmem:[#allocation10 + $0x4] ss:$8 sm:$0x3] }
 0x2cd   :  { %935 = vmatprep.subr.bf16.mxu0 %v1633_v24  ;;  %1459 = vmatpush3.bf16.msra.mxu1 %v1677_v17  ;;  %v985_v24 = vrot.slane %v550_v23, %v1955_v40 }
 0x2ce   :  { %1460 = vmatprep.subr.bf16.mxu1 %v1678_v18 }
 0x2d0   :  { %936 = vmatpush1.bf16.msra.mxu0 %v1631_v25  ;;  %v989_v25 = vrot.slane %v550_v23, %v1957_v41 }
 0x2d1   :  { %937 = vmatprep.subr.bf16.mxu0 %v1636_v26  ;;  %1461 = vmatpush3.bf16.msra.mxu1 %v1679_v19  ;;  %v552_v26 = vld [vmem:[#allocation10 + $0x5] ss:$8 sm:$0x3] }
 0x2d4   :  { %938 = vmatpush1.bf16.msra.mxu0 %v1634_v27 }
 0x2d5   :  { %939 = vmatprep.subr.bf16.mxu0 %v1639_v28 }
 0x2d8   :  { %940 = vmatpush1.bf16.msra.mxu0 %v1637_v29 }
 0x2d9   :  { %941 = vmatprep.subr.bf16.mxu0 %v1642_v30  ;;  %v1000_v30 = vrot.slane %v552_v26, %v1955_v40 }
 0x2dc   :  { %942 = vmatpush1.bf16.msra.mxu0 %v1640_v31  ;;  %v1004_v31 = vrot.slane %v552_v26, %v1957_v41  ;;  %v1680_v41 = vld [vmem:[#allocation8] sm:$0xff]  }
 0x2dd   :  { %943 = vmatprep.subr.bf16.mxu0 %v1645_v32 }
 0x2e0   :  { %944 = vmatpush1.bf16.msra.mxu0 %v1643_v33 }
 0x2e1   :  { %945 = vmatprep.subr.bf16.mxu0 %v1648_v34 }
 0x2e4   :  { %946 = vmatpush1.bf16.msra.mxu0 %v1646_v35 }
 0x2e5   :  { %947 = vmatprep.subr.bf16.mxu0 %v1651_v36 }
 0x2e8   :  { %948 = vmatpush1.bf16.msra.mxu0 %v1649_v37 }
 0x2e9   :  { %949 = vmatprep.subr.bf16.mxu0 %v1654_v38 }
 0x2ec   :  { %950 = vmatpush1.bf16.msra.mxu0 %v1652_v39 }
 0x2ed   :  { %951 = vmatprep.subr.bf16.mxu0 %v1657_v42 }
 0x2f0   :  { %952 = vmatpush1.bf16.msra.mxu0 %v1655_v43 }
 0x2f1   :  { %953 = vmatprep.subr.bf16.mxu0 %v1660_v44 }
 0x2f4   :  { %954 = vmatpush1.bf16.msra.mxu0 %v1658_v47 }
 0x2f5   :  { %955 = vmatprep.subr.bf16.mxu0 %v1663_v48  ;;  %v1047_v48 = vld [vmem:[#allocation10 + $0x6] ss:$0 sm:$0xff] }
 0x2f8   :  { %956 = vmatpush1.bf16.msra.mxu0 %v1661_v50 }
 0x2fb   :  { %958 = vmatmul.mubr.bf16.vlgmr.msra.gmra.mrb[0].mxu0 %v481_v52  ;;  %v1848_v52 = vmov 0.0  }
 0x2fc   :  { %1477 = vmatprep.subr.bf16.mxu1 %v1848_v52 }
 0x3ce   :  { %v959_v56 = vpop.f32.mrb[0].mxu0 }
 0x3cf   :  { %v1497_v57 = vadd.f32 %v959_v56, %v557_v54  ;;  %v961_v58 = vpop.f32.mrb[1].mxu0 }
 0x3d0   :  { %v1498_v59 = vadd.f32 %v961_v58, %v561_v55  ;;  %v963_v60 = vpop.f32.mrb[2].mxu0  ;;  %v1682_v58 = vld [vmem:[#allocation8 + $0x10] sm:$0xff]  }
 0x3d1   :  { %v964_v61 = vpop.f32.mrb[3].mxu0  ;;  %v1684_v60 = vld [vmem:[#allocation8 + $0x20] sm:$0xff]  }
 0x3d2   :  { %v966_v62 = vadd.f32 %v1498_v59, %v1497_v57  ;;  %v1685_v61 = vld [vmem:[#allocation8 + $0x28] sm:$0xff]  }
 0x3d4   :  { %967 = vadd.xlane.f32.xlu1 %v966_v62  ;;  %v1686_v62 = vld [vmem:[#allocation8 + $0x30] sm:$0xff]  }
 0x461   :  { %v968_v1 = vpop.xlane.xlu1 %967 }
 0x462   :  { %v970_v2 = vmul.f32 0.00390625, %v968_v1 }
 0x464   :  { %v971_v3 = vsub.f32 %v1497_v57, %v970_v2  ;;  %v972_v4 = vsub.f32 %v1498_v59, %v970_v2  ;;  %v1681_v57 = vld [vmem:[#allocation8 + $0x8] sm:$0xff]   ;;  %v1683_v59 = vld [vmem:[#allocation8 + $0x18] sm:$0xff]  }
 0x466   :  { %v973_v5 = vmul.f32 %v971_v3, %v971_v3  ;;  %v974_v6 = vmul.f32 %v972_v4, %v972_v4 }
 0x468   :  { %v975_v7 = vadd.f32 %v974_v6, %v973_v5  ;;  %v1049_v6 = vld [vmem:[#allocation10 + $0x20] ss:$0 sm:$0xff] }
 0x46a   :  { %976 = vadd.xlane.f32.xlu1 %v975_v7 }
 0x4f7   :  { %v977_v20 = vpop.xlane.xlu1 %976 }
 0x4f8   :  { %v978_v21 = vmul.f32 0.00390625, %v977_v20 }
 0x4fa   :  { %v979_v22 = vadd.f32 1e-05, %v978_v21 }
 0x4fc   :  { %1690 = vrsqrt.f32 %v979_v22 }
 0x506   :  { %v1691_v27 = vpop.eup %1690 }
 0x507   :  { %v992_v28 = vmul.f32 %v1691_v27, %v985_v24  ;;  %v993_v29 = vmul.f32 %v1691_v27, %v989_v25 }
 0x509   :  { %v995_v32 = vmul.f32 %v993_v29, %v972_v4  ;;  %v994_v33 = vmul.f32 %v992_v28, %v971_v3  ;;  %v1048_v3 = vld [vmem:[#allocation10 + $0x7] ss:$0 sm:$0xff] }
 0x50b   :  { %v1008_v34 = vadd.f32 %v1004_v31, %v995_v32  ;;  %v1007_v35 = vadd.f32 %v1000_v30, %v994_v33 }
 0x50d   :  { %v1010_v36 = vmul.f32 0.2, %v1008_v34  ;;  %v1009_v37 = vmul.f32 0.2, %v1007_v35 }
 0x50f   :  { %v1012_v38 = vmax.f32 %v1008_v34, %v1010_v36  ;;  %v1011_v39 = vmax.f32 %v1007_v35, %v1009_v37 }
 0x511   :  { %v1014_v42 = vpack.c.bf16 %v1012_v38, %v1012_v38  ;;  %v1013_v43 = vpack.c.bf16 %v1011_v39, %v1011_v39 }
 0x513   :  { %1178 = vmatprep.mubr.bf16.mxu1 %v1014_v42 }
 0x514   :  { %1179 = vmatmul.mubr.bf16.vlgmr.msra.gmra.mrb[8].mxu1 %v1013_v43 }
 0x515   :  { %1478 = vmatpush3.bf16.msra.mxu1 %v1680_v41  ;;  %1493 = vmatprep.mubr.msk.bf16.mxu1 %vm1849_vm0, %v1848_v52 }
 0x516   :  { %1479 = vmatprep.subr.bf16.mxu1 %v1848_v52 }
 0x519   :  { %1480 = vmatpush3.bf16.msra.mxu1 %v1681_v57 }
 0x51a   :  { %1481 = vmatprep.subr.bf16.mxu1 %v1848_v52 }
 0x51d   :  { %1482 = vmatpush3.bf16.msra.mxu1 %v1682_v58 }
 0x51e   :  { %1483 = vmatprep.subr.bf16.mxu1 %v1848_v52 }
 0x521   :  { %1484 = vmatpush3.bf16.msra.mxu1 %v1683_v59 }
 0x522   :  { %1485 = vmatprep.subr.bf16.mxu1 %v1848_v52 }
 0x525   :  { %1486 = vmatpush3.bf16.msra.mxu1 %v1684_v60 }
 0x526   :  { %1487 = vmatprep.subr.bf16.mxu1 %v1848_v52 }
 0x529   :  { %1488 = vmatpush3.bf16.msra.mxu1 %v1685_v61 }
 0x52a   :  { %1489 = vmatprep.subr.bf16.mxu1 %v1848_v52 }
 0x52d   :  { %1490 = vmatpush3.bf16.msra.mxu1 %v1686_v62 }
 0x52e   :  { %1491 = vmatprep.subr.bf16.mxu1 %v1848_v52 }
 0x531   :  { %1492 = vmatpush3.bf16.msra.mxu1 %v1687_v63 }
 0x5e7   :  { %v1462_v44 = vpop.f32.mrb[8].mxu1 }
 0x5e8   :  { %v1463_v47 = vpop.f32.mrb[9].mxu1 }
 0x5e9   :  { %v1464_v49 = vadd.f32 %v1463_v47, %v1462_v44  ;;  %v1465_v50 = vpop.f32.mrb[10].mxu1 }
 0x5ea   :  { %v1466_v40 = vpop.f32.mrb[11].mxu1 }
 0x5eb   :  { %v1181_v51 = vadd.f32 %v1464_v49, %v1047_v48 }
 0x5ed   :  { %1186 = vadd.xlane.f32.xlu0 %v1181_v51 }
 0x67a   :  { %v1187_v53 = vpop.xlane.xlu0 %1186 }
 0x67b   :  { %v1189_v54 = vmul.f32 0.0078125, %v1187_v53 }
 0x67d   :  { %v1190_v55 = vsub.f32 %v1181_v51, %v1189_v54 }
 0x67f   :  { %v1191_v56 = vmul.f32 %v1190_v55, %v1190_v55 }
 0x681   :  { %1192 = vadd.xlane.f32.xlu1 %v1191_v56 }
 0x70e   :  { %v1193_v0 = vpop.xlane.xlu1 %1192 }
 0x70f   :  { %v1194_v1 = vmul.f32 0.0078125, %v1193_v0 }
 0x711   :  { %v1195_v2 = vadd.f32 1e-05, %v1194_v1 }
 0x713   :  { %1692 = vrsqrt.f32 %v1195_v2 }
 0x71d   :  { %v1693_v4 = vpop.eup %1692 }
 0x71e   :  { %v1197_v5 = vmul.f32 %v1693_v4, %v1048_v3 }
 0x720   :  { %v1198_v7 = vmul.f32 %v1197_v5, %v1190_v55 }
 0x722   :  { %v1199_v8 = vadd.f32 %v1198_v7, %v1049_v6 }
 0x724   :  { %v1200_v9 = vmul.f32 0.2, %v1199_v8 }
 0x726   :  { %v1201_v10 = vmax.f32 %v1199_v8, %v1200_v9 }
 0x728   :  { %v1202_v11 = vpack.c.bf16 %v1201_v10, %v1201_v10 }
 0x72a   :  { %1494 = vmatmul.mubr.bf16.vlgmr.msra.gmra.mrb[12].mxu1 %v1202_v11 }
 0x7fd   :  { %v1302_v12 = vpop.f32.mrb[12].mxu1 }
 0x7fe   :  { %v1303_v45 = vadd.f32 %v1302_v12, %v1219_v46  ;;  %v1495_v13 = vpop.f32.mrb[13].mxu1 }
 0x7ff   :  { %v1305_v14 = vpop.f32.mrb[14].mxu1 }
 0x800   :  { %1308 = vst [vmem:[#allocation11] sm:$0xff] %v1303_v45  ;;  %v1496_v15 = vpop.f32.mrb[15].mxu1 }
 0x801   :  { %1815 = shalt.err (!%p1812_p2)
}
 0x802   :  { %s1816_s17 = scalar_lea.hbm %s2003_s6, 128 }
 0x803   :  { %p1817_p3 = scmp.ne.s32.totalorder %s2003_s6, %s1816_s17  ;;  %p1820_p4 = scmp.lt.u32.totalorder %s1816_s17, %s2003_s6 }
 0x805   :  { %p1822_p5 = pnand %p1820_p4, %p1817_p3 }
 0x807   :  { %1825 = shalt.err (!%p1822_p5)
}
 0x808   :  { %1318 = dma.vmem_to_hbm [thread:$0]  %s1316_s12, 128, %s2003_s6, [#allocation4]  }
 0x809   :  { %1832 = dma.done.wait [#allocation4], 128  }
 0x80a   :  { %1833 = vsyncadd [#allocation4], 4294967168 }
 0x80b   :  { %1322 = vsyncpa [#allocation3], 1 }
 0x80c   :  { %1323 = vsyncpa [#allocation6], 1 }
 0x80d   :  { %1324 = vsyncpa [#allocation9], 1 }
 0x80e   :  { %1325 = vsyncpa [#allocation4], 1 }

</bundles_post_ra>
